<compile_context>
chip_gen: v6e
topology: v6e:2x2x1
jax: 0.10.0
libtpu: 0.0.40
codegen_flags: <defaults>
</compile_context>

<pallas_src>
import functools

import jax
import jax.numpy as jnp
from jax.experimental import pallas as pl
from jax.experimental.pallas import tpu as pltpu

KH, KW = 3, 3
ACTNORM_SCALE = 1.0
LANE = 128


def _conv_stats_kernel(x_ref, w_ref, y_ref, stats_ref, *, TH, W, Cin, Cpad):
    """3x3 'same' conv on one (batch, row-tile) + fused ActNorm partial stats.

    x_ref    : (1, TH+2, W+2, Cin)   halo'd input row tile (VMEM)
    w_ref    : (KH*KW*Cin, Cpad)     im2col weight matrix, Cout zero-padded to 128
    y_ref    : (1, TH, W, Cpad)      conv output tile (lane-dense, 128-wide)
    stats_ref: (1, 1, 2, Cpad)       per-tile [sum, sum_of_squares] per channel
    """
    # Build the im2col patch once per tile: 9 shifted views -> one (TH*W, 9*Cin)
    # buffer feeding a single well-shaped MXU matmul (instead of 9 degenerate ones).
    cols = []
    for kh in range(KH):
        for kw in range(KW):
            cols.append(
                x_ref[0, kh:kh + TH, kw:kw + W, :].reshape(TH * W, Cin))
    patch = jnp.concatenate(cols, axis=-1)                    # (TH*W, KH*KW*Cin)

    # Single MXU matmul with a lane-dense (128-wide) output; f32 accumulation.
    y = jnp.dot(patch, w_ref[...], preferred_element_type=jnp.float32)

    y_ref[...] = y.reshape(1, TH, W, Cpad)

    # Fused ActNorm statistics for this tile (padded channels are all-zero and
    # are dropped in the wrapper). Accumulated in f32.
    s1 = jnp.sum(y, axis=0, keepdims=True)                    # (1, Cpad)
    s2 = jnp.sum(y * y, axis=0, keepdims=True)                # (1, Cpad)
    stats_ref[...] = jnp.concatenate([s1, s2], axis=0).reshape(1, 1, 2, Cpad)


def _actnorm_apply_kernel(y_ref, mean_ref, gain_ref, o_ref):
    """out = (y - mean) * gain, tiled over (batch, row-tile), lane-dense stores."""
    o_ref[...] = ((y_ref[...] - mean_ref[...]) * gain_ref[...]).astype(o_ref.dtype)


def conv2d_actnorm(x_nchw, weight_oihw, *, row_tile=8):
    """Forward pass of the PyTorch `Conv2d` module (do_actnorm=True, training init)."""
    N, Cin, H, W = x_nchw.shape
    Cout = weight_oihw.shape[0]
    Cpad = ((Cout + LANE - 1) // LANE) * LANE                 # lane-dense channel pad

    # Row tile: largest divisor of H that is <= row_tile. Per-step VMEM footprint
    # scales with TH; for big glow shapes pick TH so
    #   ((TH+2)*(W+2)*Cin + TH*W*Cpad) * 4B * 2(double-buffer) stays well under
    # the per-chip scoped VMEM (v7x: 64 MiB physical / 32 MiB default scoped).
    TH = min(row_tile, H)
    while H % TH:
        TH -= 1
    n_ht = H // TH

    # ---- wrapper-side layout prep (fused by XLA) ----
    x_nhwc = jnp.transpose(x_nchw, (0, 2, 3, 1)).astype(jnp.float32)
    x_pad = jnp.pad(x_nhwc, ((0, 0), (1, 1), (1, 1), (0, 0)))
    # Halo'd overlapping row tiles so BlockSpec auto-pipelining can be used.
    # TODO(synk): for large H, replace this gather with in-kernel manual DMA
    # (memory_space=pl.ANY + pltpu.make_async_copy) so the 2-row halo costs no
    # extra HBM pass (v5e is memory-bound).
    x_tiles = jnp.stack(
        [x_pad[:, i * TH:i * TH + TH + 2, :, :] for i in range(n_ht)], axis=1)
    x_tiles = x_tiles.reshape(N * n_ht, TH + 2, W + 2, Cin)

    # im2col weight matrix, hoisted to the wrapper: (KH*KW*Cin, Cout) -> pad Cout to 128.
    w_hwio = jnp.transpose(weight_oihw, (2, 3, 1, 0))          # (KH, KW, Cin, Cout)
    w_mat = w_hwio.reshape(KH * KW * Cin, Cout).astype(jnp.float32)
    w_mat = jnp.pad(w_mat, ((0, 0), (0, Cpad - Cout)))

    grid = (N, n_ht)
    cparams = pltpu.CompilerParams(
        dimension_semantics=("parallel", "parallel"),
        vmem_limit_bytes=32 * 1024 * 1024)

    # ---- pass 1: conv + fused per-tile ActNorm statistics ----
    conv = pl.pallas_call(
        functools.partial(_conv_stats_kernel, TH=TH, W=W, Cin=Cin, Cpad=Cpad),
        out_shape=(
            jax.ShapeDtypeStruct((N, H, W, Cpad), jnp.float32),
            jax.ShapeDtypeStruct((N, n_ht, 2, Cpad), jnp.float32),
        ),
        grid_spec=pltpu.PrefetchScalarGridSpec(
            num_scalar_prefetch=0,
            grid=grid,
            in_specs=[
                pl.BlockSpec((1, TH + 2, W + 2, Cin),
                             lambda n, h: (n * n_ht + h, 0, 0, 0)),
                pl.BlockSpec((KH * KW * Cin, Cpad), lambda n, h: (0, 0)),
            ],
            out_specs=[
                pl.BlockSpec((1, TH, W, Cpad), lambda n, h: (n, h, 0, 0)),
                pl.BlockSpec((1, 1, 2, Cpad), lambda n, h: (n, h, 0, 0)),
            ],
        ),
        compiler_params=cparams,
    )
    y, stats = conv(x_tiles, w_mat)

    # ---- tiny finish of the reduction (per-channel mean / gain) ----
    # NOTE: E[x^2]-E[x]^2 in f32; fine for moderate N*H*W, switch to a centered
    # two-pass form for very large activations.
    count = float(N * H * W)
    s = jnp.sum(stats, axis=(0, 1))                            # (2, Cpad)
    mean = s[0] / count
    var = jnp.maximum(s[1] / count - mean * mean, 0.0)
    gain = ACTNORM_SCALE / (jnp.sqrt(var) + 1e-6)
    mean_b = mean.reshape(1, 1, 1, Cpad)
    gain_b = gain.reshape(1, 1, 1, Cpad)

    # ---- pass 2: tiled, pipelined ActNorm apply ----
    apply = pl.pallas_call(
        _actnorm_apply_kernel,
        out_shape=jax.ShapeDtypeStruct((N, H, W, Cpad), jnp.float32),
        grid_spec=pltpu.PrefetchScalarGridSpec(
            num_scalar_prefetch=0,
            grid=grid,
            in_specs=[
                pl.BlockSpec((1, TH, W, Cpad), lambda n, h: (n, h, 0, 0)),
                pl.BlockSpec((1, 1, 1, Cpad), lambda n, h: (0, 0, 0, 0)),
                pl.BlockSpec((1, 1, 1, Cpad), lambda n, h: (0, 0, 0, 0)),
            ],
            out_specs=pl.BlockSpec((1, TH, W, Cpad), lambda n, h: (n, h, 0, 0)),
        ),
        compiler_params=cparams,
    )
    out_pad = apply(y, mean_b, gain_b)

    # Drop channel padding, back to PyTorch NCHW layout.
    return jnp.transpose(out_pad[..., :Cout], (0, 3, 1, 2))


def _reference(x_nchw, weight_oihw):
    """Pure-JAX reference of the same forward pass (sanity check)."""
    y = jax.lax.conv_general_dilated(
        x_nchw, weight_oihw, window_strides=(1, 1), padding="SAME",
        dimension_numbers=("NCHW", "OIHW", "NCHW"))
    mean = jnp.mean(y, axis=(0, 2, 3), keepdims=True)
    var = jnp.mean((y - mean) ** 2, axis=(0, 2, 3), keepdims=True)
    return (y - mean) * (ACTNORM_SCALE / (jnp.sqrt(var) + 1e-6))


if __name__ == "__main__":
    key = jax.random.PRNGKey(0)
    k_x, k_w = jax.random.split(key)

    N, Cin, Cout, H, W = 2, 4, 8, 16, 16
    x = jax.random.normal(k_x, (N, Cin, H, W), jnp.float32)
    # conv.weight.data.normal_(mean=0.0, std=0.05); no bias (do_actnorm=True)
    weight = 0.05 * jax.random.normal(k_w, (Cout, Cin, KH, KW), jnp.float32)

    out = conv2d_actnorm(x, weight)
    jax.block_until_ready(out)

    ref = _reference(x, weight)
    assert out.shape == (N, Cout, H, W)
    assert jnp.allclose(out, ref, atol=1e-4, rtol=1e-4)

    print("KERNEL_OK")
</pallas_src>

<mosaic_0001>
module attributes {stable_mosaic.version = 11 : i64} {
  func.func @_conv_stats_kernel(%arg0: i32, %arg1: i32, %arg2: memref<1x10x18x4xf32, #tpu.memory_space<vmem>>, %arg3: memref<36x128xf32, #tpu.memory_space<vmem>>, %arg4: memref<1x8x16x128xf32, #tpu.memory_space<vmem>>, %arg5: memref<1x1x2x128xf32, #tpu.memory_space<vmem>>) attributes {dimension_semantics = [#tpu.dimension_semantics<parallel>, #tpu.dimension_semantics<parallel>], iteration_bounds = array<i64: 2, 2>, scalar_prefetch = 0 : i64, scratch_operands = 0 : i64, tpu.core_type = #tpu.core_type<tc>, window_params = [{transform_indices = @transform_0, window_bounds = array<i64: 1, 10, 18, 4>}, {pipeline_mode = #tpu.pipeline_mode<synchronous>, transform_indices = @transform_1, window_bounds = array<i64: 36, 128>}, {transform_indices = @transform_2, window_bounds = array<i64: 1, 8, 16, 128>}, {transform_indices = @transform_3, window_bounds = array<i64: 1, 1, 2, 128>}]} {
    %c0 = arith.constant 0 : index
    %c0_0 = arith.constant 0 : index
    %c0_1 = arith.constant 0 : index
    %c0_2 = arith.constant 0 : index
    %0 = vector.load %arg2[%c0, %c0_0, %c0_1, %c0_2] : memref<1x10x18x4xf32, #tpu.memory_space<vmem>>, vector<1x8x16x4xf32>
    %1 = vector.shape_cast %0 : vector<1x8x16x4xf32> to vector<8x16x4xf32>
    %2 = vector.shape_cast %1 : vector<8x16x4xf32> to vector<128x4xf32>
    %c0_3 = arith.constant 0 : index
    %c0_4 = arith.constant 0 : index
    %c1 = arith.constant 1 : index
    %c0_5 = arith.constant 0 : index
    %3 = vector.load %arg2[%c0_3, %c0_4, %c1, %c0_5] : memref<1x10x18x4xf32, #tpu.memory_space<vmem>>, vector<1x8x16x4xf32>
    %4 = vector.shape_cast %3 : vector<1x8x16x4xf32> to vector<8x16x4xf32>
    %5 = vector.shape_cast %4 : vector<8x16x4xf32> to vector<128x4xf32>
    %c0_6 = arith.constant 0 : index
    %c0_7 = arith.constant 0 : index
    %c2 = arith.constant 2 : index
    %c0_8 = arith.constant 0 : index
    %6 = vector.load %arg2[%c0_6, %c0_7, %c2, %c0_8] : memref<1x10x18x4xf32, #tpu.memory_space<vmem>>, vector<1x8x16x4xf32>
    %7 = vector.shape_cast %6 : vector<1x8x16x4xf32> to vector<8x16x4xf32>
    %8 = vector.shape_cast %7 : vector<8x16x4xf32> to vector<128x4xf32>
    %c0_9 = arith.constant 0 : index
    %c1_10 = arith.constant 1 : index
    %c0_11 = arith.constant 0 : index
    %c0_12 = arith.constant 0 : index
    %9 = vector.load %arg2[%c0_9, %c1_10, %c0_11, %c0_12] : memref<1x10x18x4xf32, #tpu.memory_space<vmem>>, vector<1x8x16x4xf32>
    %10 = vector.shape_cast %9 : vector<1x8x16x4xf32> to vector<8x16x4xf32>
    %11 = vector.shape_cast %10 : vector<8x16x4xf32> to vector<128x4xf32>
    %c0_13 = arith.constant 0 : index
    %c1_14 = arith.constant 1 : index
    %c1_15 = arith.constant 1 : index
    %c0_16 = arith.constant 0 : index
    %12 = vector.load %arg2[%c0_13, %c1_14, %c1_15, %c0_16] : memref<1x10x18x4xf32, #tpu.memory_space<vmem>>, vector<1x8x16x4xf32>
    %13 = vector.shape_cast %12 : vector<1x8x16x4xf32> to vector<8x16x4xf32>
    %14 = vector.shape_cast %13 : vector<8x16x4xf32> to vector<128x4xf32>
    %c0_17 = arith.constant 0 : index
    %c1_18 = arith.constant 1 : index
    %c2_19 = arith.constant 2 : index
    %c0_20 = arith.constant 0 : index
    %15 = vector.load %arg2[%c0_17, %c1_18, %c2_19, %c0_20] : memref<1x10x18x4xf32, #tpu.memory_space<vmem>>, vector<1x8x16x4xf32>
    %16 = vector.shape_cast %15 : vector<1x8x16x4xf32> to vector<8x16x4xf32>
    %17 = vector.shape_cast %16 : vector<8x16x4xf32> to vector<128x4xf32>
    %c0_21 = arith.constant 0 : index
    %c2_22 = arith.constant 2 : index
    %c0_23 = arith.constant 0 : index
    %c0_24 = arith.constant 0 : index
    %18 = vector.load %arg2[%c0_21, %c2_22, %c0_23, %c0_24] : memref<1x10x18x4xf32, #tpu.memory_space<vmem>>, vector<1x8x16x4xf32>
    %19 = vector.shape_cast %18 : vector<1x8x16x4xf32> to vector<8x16x4xf32>
    %20 = vector.shape_cast %19 : vector<8x16x4xf32> to vector<128x4xf32>
    %c0_25 = arith.constant 0 : index
    %c2_26 = arith.constant 2 : index
    %c1_27 = arith.constant 1 : index
    %c0_28 = arith.constant 0 : index
    %21 = vector.load %arg2[%c0_25, %c2_26, %c1_27, %c0_28] : memref<1x10x18x4xf32, #tpu.memory_space<vmem>>, vector<1x8x16x4xf32>
    %22 = vector.shape_cast %21 : vector<1x8x16x4xf32> to vector<8x16x4xf32>
    %23 = vector.shape_cast %22 : vector<8x16x4xf32> to vector<128x4xf32>
    %c0_29 = arith.constant 0 : index
    %c2_30 = arith.constant 2 : index
    %c2_31 = arith.constant 2 : index
    %c0_32 = arith.constant 0 : index
    %24 = vector.load %arg2[%c0_29, %c2_30, %c2_31, %c0_32] : memref<1x10x18x4xf32, #tpu.memory_space<vmem>>, vector<1x8x16x4xf32>
    %25 = vector.shape_cast %24 : vector<1x8x16x4xf32> to vector<8x16x4xf32>
    %26 = vector.shape_cast %25 : vector<8x16x4xf32> to vector<128x4xf32>
    %27 = tpu.concatenate %2, %5, %8, %11, %14, %17, %20, %23, %26 in 1 : vector<128x4xf32>, vector<128x4xf32>, vector<128x4xf32>, vector<128x4xf32>, vector<128x4xf32>, vector<128x4xf32>, vector<128x4xf32>, vector<128x4xf32>, vector<128x4xf32> -> vector<128x36xf32>
    %c0_33 = arith.constant 0 : index
    %c0_34 = arith.constant 0 : index
    %28 = vector.load %arg3[%c0_33, %c0_34] : memref<36x128xf32, #tpu.memory_space<vmem>>, vector<36x128xf32>
    %cst = arith.constant dense<0.000000e+00> : vector<128x128xf32>
    %29 = tpu.matmul %27, %28, %cst {dimension_numbers = #tpu.dot_dimension_numbers<[1], [0], [0], [1], [0, 0, 1, 1], [], []>} : vector<128x36xf32>, vector<36x128xf32>, vector<128x128xf32> -> vector<128x128xf32>
    %30 = vector.shape_cast %29 : vector<128x128xf32> to vector<1x8x16x128xf32>
    %c0_35 = arith.constant 0 : index
    %c0_36 = arith.constant 0 : index
    %c0_37 = arith.constant 0 : index
    %c0_38 = arith.constant 0 : index
    %31 = vector.load %arg4[%c0_35, %c0_36, %c0_37, %c0_38] : memref<1x8x16x128xf32, #tpu.memory_space<vmem>>, vector<1x8x16x128xf32>
    tpu.vector_store %arg4[%c0_35, %c0_36, %c0_37, %c0_38], %30 {strides = array<i32>} : memref<1x8x16x128xf32, #tpu.memory_space<vmem>>, vector<1x8x16x128xf32>,
    %cst_39 = arith.constant dense<0.000000e+00> : vector<128xf32>
    %32 = vector.multi_reduction <add>, %29, %cst_39 [0] : vector<128x128xf32> to vector<128xf32>
    %33 = vector.shape_cast %32 : vector<128xf32> to vector<1x128xf32>
    %34 = arith.mulf %29, %29 : vector<128x128xf32>
    %cst_40 = arith.constant dense<0.000000e+00> : vector<128xf32>
    %35 = vector.multi_reduction <add>, %34, %cst_40 [0] : vector<128x128xf32> to vector<128xf32>
    %36 = vector.shape_cast %35 : vector<128xf32> to vector<1x128xf32>
    %37 = tpu.concatenate %33, %36 in 0 : vector<1x128xf32>, vector<1x128xf32> -> vector<2x128xf32>
    %38 = vector.shape_cast %37 : vector<2x128xf32> to vector<1x1x2x128xf32>
    %c0_41 = arith.constant 0 : index
    %c0_42 = arith.constant 0 : index
    %c0_43 = arith.constant 0 : index
    %c0_44 = arith.constant 0 : index
    %39 = vector.load %arg5[%c0_41, %c0_42, %c0_43, %c0_44] : memref<1x1x2x128xf32, #tpu.memory_space<vmem>>, vector<1x1x2x128xf32>
    tpu.vector_store %arg5[%c0_41, %c0_42, %c0_43, %c0_44], %38 {strides = array<i32>} : memref<1x1x2x128xf32, #tpu.memory_space<vmem>>, vector<1x1x2x128xf32>,
    return
  }
  func.func @transform_0(%arg0: i32, %arg1: i32) -> (i32, i32, i32, i32) {
    %c2_i32 = arith.constant 2 : i32
    %0 = arith.muli %arg0, %c2_i32 : i32
    %1 = arith.addi %0, %arg1 : i32
    %c0_i32 = arith.constant 0 : i32
    %c0_i32_0 = arith.constant 0 : i32
    %c0_i32_1 = arith.constant 0 : i32
    %c0_i32_2 = arith.constant 0 : i32
    return %1, %c0_i32, %c0_i32_0, %c0_i32_1 : i32, i32, i32, i32
  }
  func.func @transform_1(%arg0: i32, %arg1: i32) -> (i32, i32) {
    %c0_i32 = arith.constant 0 : i32
    %c0_i32_0 = arith.constant 0 : i32
    %c0_i32_1 = arith.constant 0 : i32
    return %c0_i32, %c0_i32_0 : i32, i32
  }
  func.func @transform_2(%arg0: i32, %arg1: i32) -> (i32, i32, i32, i32) {
    %c0_i32 = arith.constant 0 : i32
    %c0_i32_0 = arith.constant 0 : i32
    %c0_i32_1 = arith.constant 0 : i32
    return %arg0, %arg1, %c0_i32, %c0_i32_0 : i32, i32, i32, i32
  }
  func.func @transform_3(%arg0: i32, %arg1: i32) -> (i32, i32, i32, i32) {
    %c0_i32 = arith.constant 0 : i32
    %c0_i32_0 = arith.constant 0 : i32
    %c0_i32_1 = arith.constant 0 : i32
    return %arg0, %arg1, %c0_i32, %c0_i32_0 : i32, i32, i32, i32
  }
}

</mosaic_0001>

<bundles_post_ra>
// kernel: tpu_custom_call.1
= control target key start
LH: loop header
LB: loop body
LE: loop exit
PB: predicated region body
PF: predicated region fallthrough
CT: control target
= control target key end

     0   :  { %9 = vsyncpa [#allocation3], 0  ;;  %s2553_s0 = inlined_call_operand.vmem [shape: f32[4,10,18,4], index: 0, kind: input, shape index: {}]   ;;  %s2554_s1 = inlined_call_operand.vmem [shape: f32[36,128], index: 1, kind: input, shape index: {}]   ;;  %s2555_s2 = inlined_call_operand.hbm [shape: f32[2,16,16,128], index: 2, kind: output, shape index: {0}]   ;;  %s2556_s3 = inlined_call_operand.hbm [shape: f32[2,2,2,128], index: 3, kind: output, shape index: {1}]  }
   0x1   :  { %11 = vsyncpa [#allocation3 + $0x1], 0 }
   0x2   :  { %12 = vsyncpa [#allocation5], 0 }
   0x3   :  { %14 = vsyncpa [#allocation5 + $0x1], 0  ;;  %s1873_s12 = smov 0   ;;  %s1875_s13 = smov 0  }
   0x4   :  { %s1877_s14 = smov 0   ;;  %s1879_s15 = smov 0  }
   0x5   :  { %s1881_s16 = smov 0   ;;  %s1883_s17 = smov 0  }
   0x6   :  { %s1885_s18 = smov 0   ;;  %s1887_s19 = smov 0  }
   0x7 LB: > { %s1432_s20 = sadd.s32 4294967295, %s1840_s19   ;;  %s1433_s21 = sadd.s32 4294967294, %s1840_s19   ;;  %s1840_s19 = sphi %s1887_s19, %s20_s19   ;;  %s1836_s18 = sphi %s1885_s18, %s2565_s18   ;;  %s1832_s17 = sphi %s1883_s17, %s2564_s17   ;;  %s1828_s16 = sphi %s1881_s16, %s2563_s16   ;;  %s1824_s15 = sphi %s1879_s15, %s2562_s15   ;;  %s1820_s14 = sphi %s1877_s14, %s2561_s14   ;;  %s1816_s13 = sphi %s1875_s13, %s2560_s13   ;;  %s1812_s12 = sphi %s1873_s12, %s2559_s12  }
   0x8   : > { %s29_s22 = sadd.s32 1, %s1832_s17  ;;  %s32_s23 = sadd.s32 1, %s1836_s18 }
   0x9   : > { %p30_p0 = scmp.ge.s32.totalorder %s29_s22, 2  ;;  %p102_p1 = scmp.ne.s32.totalorder %s1820_s14, %s1816_s13 }
   0xa   : > { %p103_p2 = scmp.eq.s32.totalorder %s1432_s20, 3  ;;  %p108_p5 = scmp.ne.s32.totalorder %s1816_s13, %s1812_s12 }
   0xb   : > { %s2567_s22 = smov (%p30_p0, %s29_s22), 0  ;;  %s2569_s23 = smov (!%p30_p0, %s32_s23), %s1836_s18 }
   0xc   : > { %s88_s24 = ssub.s32 %s1832_s17, %s2567_s22  ;;  %p1924_p3 = por %p103_p2, %p102_p1 }
   0xd   : > { %p34_p4 = scmp.ge.s32.totalorder %s2569_s23, 2  ;;  %p109_p6 = scmp.eq.s32.totalorder %s1433_s21, 3 }
   0xe   : > { %p1438_p7 = scmp.ge.s32.totalorder %s1840_s19, 1  ;;  %p170_p9 = scmp.lt.s32.totalorder %s1840_s19, 5 }
   0xf   : > { %s2571_s23 = smov (%p34_p4, %s2569_s23), 0  ;;  %p1933_p8 = por %p109_p6, %p108_p5 }
  0x10   : > { %s87_s27 = ssub.s32 %s1836_s18, %s2571_s23  ;;  %s92_s28 = sadd.s32 1, %s1820_s14 }
  0x11   : > { %s89_s29 = sor.u32 %s88_s24, %s87_s27  ;;  %p171_p10 = pnand %p1438_p7, %p170_p9 }
  0x12   : > { %p90_p11 = scmp.eq.s32.totalorder %s89_s29, 0  ;;  %s1441_s4 = sshll.u32 (!%p171_p10), %s1828_s16, 1 }
  0x13   : > { %174 = sbr.rel (%p171_p10) target bundleno = 637 (0x27d), region = 28  ;;  %s1946_s5 = sadd.s32 (!%p171_p10), %s1824_s15, %s1441_s4 }
  0x14   : > { %s1942_s30 = scalar_select %p90_p11, %s1820_s14, %s92_s28  }
  0x15   : > { %p203_p12 = scmp.lt.s32.totalorder (!%p171_p10), %s1946_s5, 3  ;;  %s1842_s11 = smov (!%p171_p10), 8  }
  0x16   : > { %s1843_s20 = smov (!%p171_p10), 4   ;;  %s1844_s21 = smov (!%p171_p10), 12  }
  0x17   : > { %s1845_s24 = smov (!%p171_p10), 16   ;;  %s1846_s27 = smov (!%p171_p10), 20  }
  0x18   : > { %s204_s6 = scalar_select %p203_p12, %s1946_s5, 3  ;;  %v1009_v11 = vld [vmem:[%s2554_s1 + $0x20] sm:$0xf]  ;;  %vm1059_vm0 = vcmask 1043456   ;;  %v1008_v12 = vld [vmem:[%s2554_s1 + $0x18] sm:$0xff]  ;;  %v1007_v15 = vld [vmem:[%s2554_s1 + $0x10] sm:$0xff] }
  0x19   : > { %s1847_s28 = smov 24   ;;  %1588 = vmatprep.subr.msk.mxu0 %vm1059_vm0, %v1009_v11  ;;  %1622 = vmatprep.subr.msk.mxu1 %vm1059_vm0, %v1009_v11  ;;  %v1006_v16 = vld [vmem:[%s2554_s1 + $0x8] sm:$0xff]  ;;  %v1005_v17 = vld [vmem:[%s2554_s1] sm:$0xff]  ;;  %s1849_s9 = smov 32   ;;  %vm869_vm1 = vcmask 31744   ;;  %vm886_vm2 = vcmask 64512  }
  0x1a   : > { %s1632_s7 = smul.u32 240, %s204_s6  ;;  %1589 = vmatpush3.msk.msra.mxu0 %vm1059_vm0, %v1009_v11  ;;  %1627 = vmatpush3.msk.msra.mxu1 %vm1059_vm0, %v1009_v11  ;;  %s1848_s6 = smov 28   ;;  %vm903_vm3 = vcmask 97280   ;;  %vm920_vm4 = vcmask 130048   ;;  %vm937_vm5 = vcmask 162816   ;;  %vm954_vm6 = vcmask 195584  }
  0x1b   : > { %1590 = vmatprep.subr.mxu0 %v1008_v12  ;;  %1623 = vmatprep.subr.mxu1 %v1008_v12  ;;  %vm971_vm7 = vcmask 228352   ;;  %vm988_vm8 = vcmask 261120   ;;  %vm1010_vm9 = vcmask 293888  }
  0x1c   : > { %s1953_s10 = scalar_lea.vmem %s2553_s0, %s1632_s7  ;;  %1591 = vmatpush3.msra.mxu0 %v1008_v12  ;;  %1628 = vmatpush3.msra.mxu1 %v1008_v12 }
  0x1d   : > { %v243_v0 = vld [vmem:[%s1953_s10 + $0x2] sm:$0xff]  ;;  %v244_v2 = vld [vmem:[%s1953_s10 + $0xa] sm:$0xff]  ;;  %v1967_v5 = vld [vmem:[%s1953_s10 + $0x18] sm:$0xff]  ;;  %1592 = vmatprep.subr.mxu0 %v1007_v15  ;;  %1624 = vmatprep.subr.mxu1 %v1007_v15 }
  0x1e   : > { %v227_v1 = vld [vmem:[%s1953_s10 + $0x1] sm:$0xff]  ;;  %437 = vrot.lane.b32.xlu1 %v243_v0, %s1842_s11  ;;  %v228_v3 = vld [vmem:[%s1953_s10 + $0x9] sm:$0xff]  ;;  %v229_v6 = vld [vmem:[%s1953_s10 + $0x19] sm:$0xff]  ;;  %1593 = vmatpush3.msra.mxu0 %v1007_v15 }
  0x1f   : > { %373 = vrot.lane.b32.xlu0 %v227_v1, %s1843_s20  ;;  %v1964_v4 = vld [vmem:[%s1953_s10 + $0x20] sm:$0xff]  ;;  %v1983_v9 = vld [vmem:[%s1953_s10 + $0x30] sm:$0xff]  ;;  %v2000_v14 = vld [vmem:[%s1953_s10 + $0x38] sm:$0xff]  ;;  %1629 = vmatpush3.msra.mxu1 %v1007_v15 }
  0x20   : > { %v1475_v7 = vld [vmem:[%s1953_s10 + $0x1a] sm:$0xff]  ;;  %v1476_v10 = vld [vmem:[%s1953_s10 + $0x22] sm:$0xff]  ;;  %v1507_v13 = vld [vmem:[%s1953_s10 + $0x31] sm:$0xff]  ;;  %1594 = vmatprep.subr.mxu0 %v1006_v16  ;;  %1625 = vmatprep.subr.mxu1 %v1006_v16 }
  0x21   : > { %v1460_v8 = vld [vmem:[%s1953_s10 + $0x21] sm:$0xff]  ;;  %1595 = vmatpush3.msra.mxu0 %v1006_v16  ;;  %1630 = vmatpush3.msra.mxu1 %v1006_v16  ;;  %v1523_v18 = vld [vmem:[%s1953_s10 + $0x32] sm:$0xff]  ;;  %v1509_v22 = vld [vmem:[%s1953_s10 + $0x49] sm:$0xff] }
  0x22   : > { %439 = vrot.lane.b32.xlu1 %v244_v2, %s1842_s11  ;;  %v1508_v19 = vld [vmem:[%s1953_s10 + $0x39] sm:$0xff]  ;;  %1596 = vmatprep.subr.mxu0 %v1005_v17  ;;  %v2029_v21 = vld [vmem:[%s1953_s10 + $0x48] sm:$0xff]  ;;  %v2039_v23 = vld [vmem:[%s1953_s10 + $0x50] sm:$0xff] }
  0x23   : > { %375 = vrot.lane.b32.xlu0 %v228_v3, %s1843_s20  ;;  %1626 = vmatprep.subr.mxu1 %v1005_v17  ;;  %v1524_v20 = vld [vmem:[%s1953_s10 + $0x3a] sm:$0xff]  ;;  %v1525_v24 = vld [vmem:[%s1953_s10 + $0x4a] sm:$0xff]  ;;  %v1526_v26 = vld [vmem:[%s1953_s10 + $0x52] sm:$0xff] }
  0x24   : > { %1597 = vmatpush3.msra.mxu0 %v1005_v17  ;;  %1631 = vmatpush3.msra.mxu1 %v1005_v17  ;;  %v1510_v25 = vld [vmem:[%s1953_s10 + $0x51] sm:$0xff]  ;;  %v2059_v27 = vld [vmem:[%s1953_s10 + $0x60] sm:$0xff]  ;;  %v2069_v29 = vld [vmem:[%s1953_s10 + $0x68] sm:$0xff] }
  0x25   : > { %v1511_v28 = vld [vmem:[%s1953_s10 + $0x61] sm:$0xff]  ;;  %v1512_v31 = vld [vmem:[%s1953_s10 + $0x69] sm:$0xff]  ;;  %v2089_v35 = vld [vmem:[%s1953_s10 + $0x78] sm:$0xff] }
  0x26   : > { %503 = vrot.lane.b32.xlu1 %v1964_v4, %s1844_s21  ;;  %v1527_v30 = vld [vmem:[%s1953_s10 + $0x62] sm:$0xff]  ;;  %v1528_v32 = vld [vmem:[%s1953_s10 + $0x6a] sm:$0xff]  ;;  %v1513_v40 = vld [vmem:[%s1953_s10 + $0x79] sm:$0xff] }
  0x27   : > { %501 = vrot.lane.b32.xlu0 %v1967_v5, %s1844_s21  ;;  %v2103_v41 = vld [vmem:[%s1953_s10 + $0x80] sm:$0xff]  ;;  %v2136_v60 = vld [vmem:[%s1953_s10 + $0x90] sm:$0xff]  ;;  %v212_v0 = vld [vmem:[%s1953_s10 + $0x8] sm:$0xff] }
  0x28   : > { %v1529_v46 = vld [vmem:[%s1953_s10 + $0x7a] sm:$0xff]  ;;  %v1530_v52 = vld [vmem:[%s1953_s10 + $0x82] sm:$0xff] }
  0x29   : > { %v1514_v47 = vld [vmem:[%s1953_s10 + $0x81] sm:$0xff]  ;;  %v2161_v15 = vld [vmem:[%s1953_s10 + $0x98] sm:$0xff] }
  0x2a   : > { %377 = vrot.lane.b32.xlu1 %v229_v6, %s1843_s20  ;;  %v211_v55 = vld [vmem:[%s1953_s10] sm:$0xff] }
  0x2b   : > { %565 = vrot.lane.b32.xlu0 %v229_v6, %s1845_s24 }
  0x2e   : > { %629 = vrot.lane.b32.xlu1 %v1475_v7, %s1846_s27 }
  0x2f   : > { %567 = vrot.lane.b32.xlu0 %v1460_v8, %s1845_s24 }
  0x32   : > { %441 = vrot.lane.b32.xlu1 %v1475_v7, %s1842_s11 }
  0x33   : > { %379 = vrot.lane.b32.xlu0 %v1460_v8, %s1843_s20 }
  0x36   : > { %693 = vrot.lane.b32.xlu1 %v1983_v9, %s1847_s28 }
  0x37   : > { %631 = vrot.lane.b32.xlu0 %v1476_v10, %s1846_s27 }
  0x3a   : > { %505 = vrot.lane.b32.xlu1 %v1983_v9, %s1844_s21 }
  0x3b   : > { %443 = vrot.lane.b32.xlu0 %v1476_v10, %s1842_s11 }
  0x3e   : > { %757 = vrot.lane.b32.xlu1 %v1507_v13, %s1848_s6 }
  0x3f   : > { %695 = vrot.lane.b32.xlu0 %v2000_v14, %s1847_s28 }
  0x42   : > { %569 = vrot.lane.b32.xlu1 %v1507_v13, %s1845_s24 }
  0x43   : > { %507 = vrot.lane.b32.xlu0 %v2000_v14, %s1844_s21 }
  0x46   : > { %821 = vrot.lane.b32.xlu1 %v1523_v18, %s1849_s9 }
  0x47   : > { %759 = vrot.lane.b32.xlu0 %v1508_v19, %s1848_s6 }
  0x4a   : > { %571 = vrot.lane.b32.xlu1 %v1508_v19, %s1845_s24 }
  0x4b   : > { %381 = vrot.lane.b32.xlu0 %v1507_v13, %s1843_s20  ;;  %v1515_v13 = vld [vmem:[%s1953_s10 + $0x91] sm:$0xff] }
  0x4e   : > { %823 = vrot.lane.b32.xlu1 %v1524_v20, %s1849_s9 }
  0x4f   : > { %633 = vrot.lane.b32.xlu0 %v1523_v18, %s1846_s27 }
  0x52   : > { %445 = vrot.lane.b32.xlu1 %v1523_v18, %s1842_s11 }
  0x53   : > { %383 = vrot.lane.b32.xlu0 %v1508_v19, %s1843_s20 }
  0x56   : > { %697 = vrot.lane.b32.xlu1 %v2029_v21, %s1847_s28 }
  0x57   : > { %635 = vrot.lane.b32.xlu0 %v1524_v20, %s1846_s27 }
  0x5a   : > { %509 = vrot.lane.b32.xlu1 %v2029_v21, %s1844_s21 }
  0x5b   : > { %447 = vrot.lane.b32.xlu0 %v1524_v20, %s1842_s11 }
  0x5e   : > { %761 = vrot.lane.b32.xlu1 %v1509_v22, %s1848_s6 }
  0x5f   : > { %699 = vrot.lane.b32.xlu0 %v2039_v23, %s1847_s28 }
  0x62   : > { %573 = vrot.lane.b32.xlu1 %v1509_v22, %s1845_s24 }
  0x63   : > { %511 = vrot.lane.b32.xlu0 %v2039_v23, %s1844_s21 }
  0x66   : > { %825 = vrot.lane.b32.xlu1 %v1525_v24, %s1849_s9 }
  0x67   : > { %763 = vrot.lane.b32.xlu0 %v1510_v25, %s1848_s6 }
  0x6a   : > { %575 = vrot.lane.b32.xlu1 %v1510_v25, %s1845_s24 }
  0x6b   : > { %385 = vrot.lane.b32.xlu0 %v1509_v22, %s1843_s20 }
  0x6e   : > { %827 = vrot.lane.b32.xlu1 %v1526_v26, %s1849_s9 }
  0x6f   : > { %637 = vrot.lane.b32.xlu0 %v1525_v24, %s1846_s27 }
  0x72   : > { %449 = vrot.lane.b32.xlu1 %v1525_v24, %s1842_s11 }
  0x73   : > { %387 = vrot.lane.b32.xlu0 %v1510_v25, %s1843_s20 }
  0x76   : > { %701 = vrot.lane.b32.xlu1 %v2059_v27, %s1847_s28 }
  0x77   : > { %639 = vrot.lane.b32.xlu0 %v1526_v26, %s1846_s27 }
  0x7a   : > { %513 = vrot.lane.b32.xlu1 %v2059_v27, %s1844_s21 }
  0x7b   : > { %451 = vrot.lane.b32.xlu0 %v1526_v26, %s1842_s11 }
  0x7e   : > { %765 = vrot.lane.b32.xlu1 %v1511_v28, %s1848_s6 }
  0x7f   : > { %703 = vrot.lane.b32.xlu0 %v2069_v29, %s1847_s28 }
  0x82   : > { %577 = vrot.lane.b32.xlu1 %v1511_v28, %s1845_s24 }
  0x83   : > { %515 = vrot.lane.b32.xlu0 %v2069_v29, %s1844_s21 }
  0x86   : > { %829 = vrot.lane.b32.xlu1 %v1527_v30, %s1849_s9 }
  0x87   : > { %767 = vrot.lane.b32.xlu0 %v1512_v31, %s1848_s6 }
  0x8a   : > { %579 = vrot.lane.b32.xlu1 %v1512_v31, %s1845_s24 }
  0x8b   : > { %389 = vrot.lane.b32.xlu0 %v1511_v28, %s1843_s20 }
  0x8e   : > { %831 = vrot.lane.b32.xlu1 %v1528_v32, %s1849_s9 }
  0x8f   : > { %641 = vrot.lane.b32.xlu0 %v1527_v30, %s1846_s27 }
  0x90   : > { %v438_v33 = vpop.permute.xlu1 %437 }
  0x91   : > { %v374_v34 = vpop.permute.xlu0 %373 }
  0x92   : > { %453 = vrot.lane.b32.xlu1 %v1527_v30, %s1842_s11  ;;  %v870_v56 = vsel %vm869_vm1, %v211_v55, %v374_v34  ;;  %v1531_v30 = vld [vmem:[%s1953_s10 + $0x92] sm:$0xff] }
  0x93   : > { %391 = vrot.lane.b32.xlu0 %v1512_v31, %s1843_s20  ;;  %v887_v59 = vsel %vm886_vm2, %v870_v56, %v438_v33  ;;  %v1516_v31 = vld [vmem:[%s1953_s10 + $0x99] sm:$0xff] }
  0x94   : > { %v2091_v36 = vpop.permute.xlu1 %439 }
  0x95   : > { %v376_v37 = vpop.permute.xlu0 %375 }
  0x96   : > { %705 = vrot.lane.b32.xlu1 %v2089_v35, %s1847_s28  ;;  %v871_v6 = vsel %vm869_vm1, %v212_v0, %v376_v37  ;;  %v1532_v37 = vld [vmem:[%s1953_s10 + $0x9a] sm:$0xff] }
  0x97   : > { %643 = vrot.lane.b32.xlu0 %v1528_v32, %s1846_s27  ;;  %v888_v12 = vsel %vm886_vm2, %v871_v6, %v2091_v36 }
  0x98   : > { %v2096_v38 = vpop.permute.xlu1 %503 }
  0x99   : > { %v502_v39 = vpop.permute.xlu0 %501  ;;  %v905_v16 = vsel %vm903_vm3, %v888_v12, %v2096_v38 }
  0x9a   : > { %517 = vrot.lane.b32.xlu1 %v2089_v35, %s1844_s21  ;;  %v904_v61 = vsel %vm903_vm3, %v887_v59, %v502_v39  ;;  %v1517_v59 = vld [vmem:[%s1953_s10 + $0xa9] sm:$0xff] }
  0x9b   : > { %455 = vrot.lane.b32.xlu0 %v1528_v32, %s1842_s11 }
  0x9c   : > { %v2105_v42 = vpop.permute.xlu1 %377 }
  0x9d   : > { %v566_v43 = vpop.permute.xlu0 %565 }
  0x9e   : > { %769 = vrot.lane.b32.xlu1 %v1513_v40, %s1848_s6  ;;  %v921_v1 = vsel %vm920_vm4, %v904_v61, %v566_v43  ;;  %v2230_v61 = vld [vmem:[%s1953_s10 + $0xb0] sm:$0xff] }
  0x9f   : > { %707 = vrot.lane.b32.xlu0 %v2103_v41, %s1847_s28 }
  0xa0   : > { %v630_v44 = vpop.permute.xlu1 %629 }
  0xa1   : > { %v568_v45 = vpop.permute.xlu0 %567  ;;  %v938_v2 = vsel %vm937_vm5, %v921_v1, %v630_v44  ;;  %v872_v44 = vsel %vm869_vm1, %v1967_v5, %v2105_v42 }
  0xa2   : > { %581 = vrot.lane.b32.xlu1 %v1513_v40, %s1845_s24  ;;  %v922_v19 = vsel %vm920_vm4, %v905_v16, %v568_v45  ;;  %v1534_v16 = vld [vmem:[%s1953_s10 + $0xb2] sm:$0xff] }
  0xa3   : > { %519 = vrot.lane.b32.xlu0 %v2103_v41, %s1844_s21 }
  0xa4   : > { %v2115_v48 = vpop.permute.xlu1 %441 }
  0xa5   : > { %v2117_v49 = vpop.permute.xlu0 %379  ;;  %v889_v45 = vsel %vm886_vm2, %v872_v44, %v2115_v48  ;;  %v1519_v44 = vld [vmem:[%s1953_s10 + $0xc1] sm:$0xff] }
  0xa6   : > { %833 = vrot.lane.b32.xlu1 %v1529_v46, %s1849_s9 }
  0xa7   : > { %771 = vrot.lane.b32.xlu0 %v1514_v47, %s1848_s6 }
  0xa8   : > { %v694_v50 = vpop.permute.xlu1 %693 }
  0xa9   : > { %v632_v51 = vpop.permute.xlu0 %631  ;;  %v955_v3 = vsel %vm954_vm6, %v938_v2, %v694_v50 }
  0xaa   : > { %583 = vrot.lane.b32.xlu1 %v1514_v47, %s1845_s24  ;;  %v939_v20 = vsel %vm937_vm5, %v922_v19, %v632_v51 }
  0xab   : > { %393 = vrot.lane.b32.xlu0 %v1513_v40, %s1843_s20 }
  0xac   : > { %v2124_v53 = vpop.permute.xlu1 %505 }
  0xad   : > { %v2126_v54 = vpop.permute.xlu0 %443 }
  0xae   : > { %835 = vrot.lane.b32.xlu1 %v1530_v52, %s1849_s9 }
  0xaf   : > { %645 = vrot.lane.b32.xlu0 %v1529_v46, %s1846_s27 }
  0xb0   : > { %v758_v57 = vpop.permute.xlu1 %757 }
  0xb1   : > { %v696_v58 = vpop.permute.xlu0 %695  ;;  %v972_v7 = vsel %vm971_vm7, %v955_v3, %v758_v57  ;;  %v873_v57 = vsel %vm869_vm1, %v1964_v4, %v2117_v49 }
  0xb2   : > { %457 = vrot.lane.b32.xlu1 %v1529_v46, %s1842_s11  ;;  %v956_v22 = vsel %vm954_vm6, %v939_v20, %v696_v58  ;;  %v2204_v46 = vld [vmem:[%s1953_s10 + $0xa8] sm:$0xff]  ;;  %v890_v58 = vsel %vm886_vm2, %v873_v57, %v2126_v54 }
  0xb3   : > { %395 = vrot.lane.b32.xlu0 %v1514_v47, %s1843_s20  ;;  %v906_v47 = vsel %vm903_vm3, %v889_v45, %v2124_v53  ;;  %v1504_v45 = vld [vmem:[%s1953_s10 + $0xc8] sm:$0xff] }
  0xb4   : > { %v2139_v62 = vpop.permute.xlu1 %569 }
  0xb5   : > { %v2141_v63 = vpop.permute.xlu0 %507  ;;  %v923_v5 = vsel %vm920_vm4, %v906_v47, %v2139_v62 }
  0xb6   : > { %709 = vrot.lane.b32.xlu1 %v2136_v60, %s1847_s28  ;;  %v907_v62 = vsel %vm903_vm3, %v890_v58, %v2141_v63 }
  0xb7   : > { %647 = vrot.lane.b32.xlu0 %v1530_v52, %s1846_s27 }
  0xb8   : > { %v822_v8 = vpop.permute.xlu1 %821 }
  0xb9   : > { %v760_v10 = vpop.permute.xlu0 %759  ;;  %v989_v11 = vsel %vm988_vm8, %v972_v7, %v822_v8  ;;  %v1533_v7 = vld [vmem:[%s1953_s10 + $0xaa] sm:$0xff] }
  0xba   : > { %521 = vrot.lane.b32.xlu1 %v2136_v60, %s1844_s21  ;;  %1598 = vmatprep.mubr.msk.f32.mxu0 %vm1010_vm9, %v989_v11  ;;  %v973_v24 = vsel %vm971_vm7, %v956_v22, %v760_v10  ;;  %v1518_v8 = vld [vmem:[%s1953_s10 + $0xb1] sm:$0xff] }
  0xbb   : > { %459 = vrot.lane.b32.xlu0 %v1530_v52, %s1842_s11 }
  0xbc   : > { %v572_v17 = vpop.permute.xlu1 %571 }
  0xbd   : > { %v2165_v18 = vpop.permute.xlu0 %381  ;;  %v924_v49 = vsel %vm920_vm4, %v907_v62, %v572_v17  ;;  %v1490_v62 = vld [vmem:[%s1953_s10 + $0xca] sm:$0xff] }
  0xbe   : > { %773 = vrot.lane.b32.xlu1 %v1515_v13, %s1848_s6 }
  0xbf   : > { %711 = vrot.lane.b32.xlu0 %v2161_v15, %s1847_s28 }
  0xc0   : > { %v824_v25 = vpop.permute.xlu1 %823 }
  0xc1   : > { %v634_v26 = vpop.permute.xlu0 %633  ;;  %v990_v28 = vsel %vm988_vm8, %v973_v24, %v824_v25  ;;  %v874_v24 = vsel %vm869_vm1, %v1983_v9, %v2165_v18 }
  0xc2   : > { %585 = vrot.lane.b32.xlu1 %v1515_v13, %s1845_s24  ;;  %1599 = vmatmul.mubr.msk.f32.vlgmr.msra.gmra.mxu0 %vm1010_vm9, %v990_v28  ;;  %v940_v42 = vsel %vm937_vm5, %v923_v5, %v634_v26  ;;  %v1503_v26 = vld [vmem:[%s1953_s10 + $0xc0] sm:$0xff] }
  0xc3   : > { %523 = vrot.lane.b32.xlu0 %v2161_v15, %s1844_s21 }
  0xc4   : > { %v2181_v32 = vpop.permute.xlu1 %445 }
  0xc5   : > { %v2183_v33 = vpop.permute.xlu0 %383  ;;  %v891_v25 = vsel %vm886_vm2, %v874_v24, %v2181_v32  ;;  %v1537_v24 = vld [vmem:[%s1953_s10 + $0xda] sm:$0xff] }
  0xc6   : > { %837 = vrot.lane.b32.xlu1 %v1531_v30, %s1849_s9 }
  0xc7   : > { %775 = vrot.lane.b32.xlu0 %v1516_v31, %s1848_s6 }
  0xc8   : > { %v698_v34 = vpop.permute.xlu1 %697 }
  0xc9   : > { %v636_v36 = vpop.permute.xlu0 %635  ;;  %v957_v48 = vsel %vm954_vm6, %v940_v42, %v698_v34 }
  0xca   : > { %587 = vrot.lane.b32.xlu1 %v1516_v31, %s1845_s24  ;;  %v941_v1 = vsel %vm937_vm5, %v924_v49, %v636_v36 }
  0xcb   : > { %397 = vrot.lane.b32.xlu0 %v1515_v13, %s1843_s20 }
  0xcc   : > { %v2190_v38 = vpop.permute.xlu1 %509 }
  0xcd   : > { %v2192_v39 = vpop.permute.xlu0 %447  ;;  %v908_v28 = vsel %vm903_vm3, %v891_v25, %v2190_v38 }
  0xce   : > { %839 = vrot.lane.b32.xlu1 %v1532_v37, %s1849_s9 }
  0xcf   : > { %649 = vrot.lane.b32.xlu0 %v1531_v30, %s1846_s27 }
  0xd0   : > { %v762_v40 = vpop.permute.xlu1 %761 }
  0xd1   : > { %v700_v43 = vpop.permute.xlu0 %699  ;;  %v974_v52 = vsel %vm971_vm7, %v957_v48, %v762_v40  ;;  %v875_v40 = vsel %vm869_vm1, %v2000_v14, %v2183_v33 }
  0xd2   : > { %461 = vrot.lane.b32.xlu1 %v1531_v30, %s1842_s11  ;;  %v958_v54 = vsel %vm954_vm6, %v941_v1, %v700_v43  ;;  %v892_v43 = vsel %vm886_vm2, %v875_v40, %v2192_v39  ;;  %v1506_v1 = vld [vmem:[%s1953_s10 + $0xe0] sm:$0xff] }
  0xd3   : > { %399 = vrot.lane.b32.xlu0 %v1516_v31, %s1843_s20 }
  0xd4   : > { %v574_v50 = vpop.permute.xlu1 %573 }
  0xd5   : > { %v2208_v51 = vpop.permute.xlu0 %511  ;;  %v925_v34 = vsel %vm920_vm4, %v908_v28, %v574_v50 }
  0xd6   : > { %713 = vrot.lane.b32.xlu1 %v2204_v46, %s1847_s28  ;;  %v909_v47 = vsel %vm903_vm3, %v892_v43, %v2208_v51 }
  0xd7   : > { %651 = vrot.lane.b32.xlu0 %v1532_v37, %s1846_s27 }
  0xd8   : > { %v826_v53 = vpop.permute.xlu1 %825 }
  0xd9   : > { %v764_v55 = vpop.permute.xlu0 %763  ;;  %v991_v56 = vsel %vm988_vm8, %v974_v52, %v826_v53  ;;  %v1535_v53 = vld [vmem:[%s1953_s10 + $0xc2] sm:$0xff] }
  0xda   : > { %525 = vrot.lane.b32.xlu1 %v2204_v46, %s1844_s21  ;;  %1601 = vmatprep.mubr.msk.f32.mxu0 %vm1010_vm9, %v991_v56  ;;  %v975_v2 = vsel %vm971_vm7, %v958_v54, %v764_v55  ;;  %v1520_v55 = vld [vmem:[%s1953_s10 + $0xc9] sm:$0xff]  ;;  %v1505_v54 = vld [vmem:[%s1953_s10 + $0xd8] sm:$0xff] }
  0xdb   : > { %463 = vrot.lane.b32.xlu0 %v1532_v37, %s1842_s11 }
  0xdc   : > { %v576_v0 = vpop.permute.xlu1 %575 }
  0xdd   : > { %v2234_v4 = vpop.permute.xlu0 %385  ;;  %v926_v14 = vsel %vm920_vm4, %v909_v47, %v576_v0 }
  0xde   : > { %777 = vrot.lane.b32.xlu1 %v1517_v59, %s1848_s6 }
  0xdf   : > { %715 = vrot.lane.b32.xlu0 %v2230_v61, %s1847_s28 }
  0xe0   : > { %v828_v3 = vpop.permute.xlu1 %827 }
  0xe1   : > { %v638_v63 = vpop.permute.xlu0 %637  ;;  %v992_v6 = vsel %vm988_vm8, %v975_v2, %v828_v3 }
  0xe2   : > { %589 = vrot.lane.b32.xlu1 %v1517_v59, %s1845_s24  ;;  %1602 = vmatmul.mubr.msk.f32.gmra.mxu0 %vm1010_vm9, %v992_v6  ;;  %v942_v9 = vsel %vm937_vm5, %v925_v34, %v638_v63  ;;  %v876_v63 = vsel %vm869_vm1, %v2029_v21, %v2234_v4  ;;  %v1538_v4 = vld [vmem:[%s1953_s10 + $0xe2] sm:$0xff] }
  0xe3   : > { %527 = vrot.lane.b32.xlu0 %v2230_v61, %s1844_s21 }
  0xe4   : > { %v2250_v10 = vpop.permute.xlu1 %449 }
  0xe5   : > { %v2252_v11 = vpop.permute.xlu0 %387  ;;  %v893_v6 = vsel %vm886_vm2, %v876_v63, %v2250_v10 }
  0xe6   : > { %841 = vrot.lane.b32.xlu1 %v1533_v7, %s1849_s9  ;;  %v877_v28 = vsel %vm869_vm1, %v2039_v23, %v2252_v11 }
  0xe7   : > { %779 = vrot.lane.b32.xlu0 %v1518_v8, %s1848_s6 }
  0xe8   : > { %v702_v12 = vpop.permute.xlu1 %701 }
  0xe9   : > { %v640_v13 = vpop.permute.xlu0 %639  ;;  %v959_v18 = vsel %vm954_vm6, %v942_v9, %v702_v12 }
  0xea   : > { %591 = vrot.lane.b32.xlu1 %v1518_v8, %s1845_s24  ;;  %v943_v33 = vsel %vm937_vm5, %v926_v14, %v640_v13 }
  0xeb   : > { %401 = vrot.lane.b32.xlu0 %v1517_v59, %s1843_s20 }
  0xec   : > { %v2259_v17 = vpop.permute.xlu1 %513 }
  0xed   : > { %v2261_v19 = vpop.permute.xlu0 %451  ;;  %v910_v12 = vsel %vm903_vm3, %v893_v6, %v2259_v17 }
  0xee   : > { %843 = vrot.lane.b32.xlu1 %v1534_v16, %s1849_s9 }
  0xef   : > { %653 = vrot.lane.b32.xlu0 %v1533_v7, %s1846_s27 }
  0xf0   : > { %v766_v20 = vpop.permute.xlu1 %765 }
  0xf1   : > { %v704_v22 = vpop.permute.xlu0 %703  ;;  %v976_v32 = vsel %vm971_vm7, %v959_v18, %v766_v20 }
  0xf2   : > { %465 = vrot.lane.b32.xlu1 %v1533_v7, %s1842_s11  ;;  %v960_v39 = vsel %vm954_vm6, %v943_v33, %v704_v22  ;;  %v1522_v7 = vld [vmem:[%s1953_s10 + $0xe1] sm:$0xff] }
  0xf3   : > { %403 = vrot.lane.b32.xlu0 %v1518_v8, %s1843_s20  ;;  %v1521_v8 = vld [vmem:[%s1953_s10 + $0xd9] sm:$0xff]  ;;  %s2419_s10 = sand.u32 1, %s1816_s13  }
  0xf4   : > { %v578_v30 = vpop.permute.xlu1 %577  ;;  %s1439_s20 = sshll.u32 %s2419_s10, 7  ;;  %s1286_s7 = scalar_lea.sflag [#allocation3], %s2419_s10 }
  0xf5   : > { %v2275_v31 = vpop.permute.xlu0 %515  ;;  %v927_v20 = vsel %vm920_vm4, %v910_v12, %v578_v30  ;;  %v894_v30 = vsel %vm886_vm2, %v877_v28, %v2261_v19 }
  0xf6   : > { %717 = vrot.lane.b32.xlu1 %v1503_v26, %s1847_s28  ;;  %v911_v34 = vsel %vm903_vm3, %v894_v30, %v2275_v31 }
  0xf7   : > { %655 = vrot.lane.b32.xlu0 %v1534_v16, %s1846_s27 }
  0xf8   : > { %v830_v36 = vpop.permute.xlu1 %829 }
  0xf9   : > { %v768_v37 = vpop.permute.xlu0 %767  ;;  %v993_v38 = vsel %vm988_vm8, %v976_v32, %v830_v36 }
  0xfa   : > { %529 = vrot.lane.b32.xlu1 %v1503_v26, %s1844_s21  ;;  %1604 = vmatprep.mubr.msk.f32.mxu0 %vm1010_vm9, %v993_v38  ;;  %v977_v42 = vsel %vm971_vm7, %v960_v39, %v768_v37 }
  0xfb   : > { %467 = vrot.lane.b32.xlu0 %v1534_v16, %s1842_s11 }
  0xfc   : > { %v580_v50 = vpop.permute.xlu1 %579 }
  0xfd   : > { %v2296_v5 = vpop.permute.xlu0 %389  ;;  %v928_v32 = vsel %vm920_vm4, %v911_v34, %v580_v50 }
  0xfe   : > { %781 = vrot.lane.b32.xlu1 %v1519_v44, %s1848_s6  ;;  %v878_v33 = vsel %vm869_vm1, %v2059_v27, %v2296_v5 }
  0xff   : > { %719 = vrot.lane.b32.xlu0 %v1504_v45, %s1847_s28 }
 0x100   : > { %v832_v48 = vpop.permute.xlu1 %831 }
 0x101   : > { %v642_v52 = vpop.permute.xlu0 %641  ;;  %v994_v51 = vsel %vm988_vm8, %v977_v42, %v832_v48 }
 0x102   : > { %593 = vrot.lane.b32.xlu1 %v1519_v44, %s1845_s24  ;;  %1605 = vmatmul.mubr.msk.f32.gmra.mxu0 %vm1010_vm9, %v994_v51  ;;  %v944_v22 = vsel %vm937_vm5, %v927_v20, %v642_v52 }
 0x103   : > { %531 = vrot.lane.b32.xlu0 %v1504_v45, %s1844_s21  ;;  %s2429_s21 = scalar_lea.vmem [#allocation2], %s1439_s20 }
 0x104   : > { %v2310_v56 = vpop.permute.xlu1 %453  ;;  %s1307_s29 = sshll.u32 %s2429_s21, 4  ;;  %s2468_s29 = int_to_ptr.vmem [resolvable:$true] %s1307_s29 }
 0x105   : > { %v2312_v57 = vpop.permute.xlu0 %391  ;;  %v895_v39 = vsel %vm886_vm2, %v878_v33, %v2310_v56  ;;  %s1718_s8 = scalar_lea.vmem %s2468_s29, 2048 }
 0x106   : > { %845 = vrot.lane.b32.xlu1 %v1535_v53, %s1849_s9  ;;  %v879_v27 = vsel %vm869_vm1, %v2069_v29, %v2312_v57  ;;  %p1719_p13 = scmp.ne.s32.totalorder %s2468_s29, %s1718_s8 }
 0x107   : > { %783 = vrot.lane.b32.xlu0 %v1520_v55, %s1848_s6 }
 0x108   : > { %v706_v58 = vpop.permute.xlu1 %705  ;;  %p1720_p0 = pnand %p1719_p13, %p1924_p3 }
 0x109   : > { %v644_v59 = vpop.permute.xlu0 %643  ;;  %v961_v21 = vsel %vm954_vm6, %v944_v22, %v706_v58 }
 0x10a   : > { %657 = vrot.lane.b32.xlu1 %v1535_v53, %s1846_s27  ;;  %v945_v36 = vsel %vm937_vm5, %v928_v32, %v644_v59  ;;  %p1721_p1 = pneg %p1720_p0 }
 0x10b   : > { %595 = vrot.lane.b32.xlu0 %v1520_v55, %s1845_s24  ;;  %s1566_s24 = sshll.u32 %s1824_s15, 4 }
 0x10c   : > { %v518_v0 = vpop.permute.xlu1 %517 }
 0x10d   : > { %v2319_v49 = vpop.permute.xlu0 %455  ;;  %v912_v42 = vsel %vm903_vm3, %v895_v39, %v518_v0 }
 0x10e   : > { %659 = vrot.lane.b32.xlu1 %v1490_v62, %s1846_s27  ;;  %v896_v5 = vsel %vm886_vm2, %v879_v27, %v2319_v49  ;;  %s1560_s27 = sshll.u32 %s1828_s16, 5 }
 0x10f   : > { %847 = vrot.lane.b32.xlu0 %v1490_v62, %s1849_s9 }
 0x110   : > { %v770_v2 = vpop.permute.xlu1 %769 }
 0x111   : > { %v708_v3 = vpop.permute.xlu0 %707  ;;  %v978_v10 = vsel %vm971_vm7, %v961_v21, %v770_v2 }
 0x112   : > { %723 = vrot.lane.b32.xlu1 %v1506_v1, %s1847_s28  ;;  %v962_v23 = vsel %vm954_vm6, %v945_v36, %v708_v3 }
 0x113   : > { %721 = vrot.lane.b32.xlu0 %v1505_v54, %s1847_s28  ;;  %s1304_s28 = sadd.s32 %s1566_s24, %s1560_s27 }
 0x114   : > { %v582_v13 = vpop.permute.xlu1 %581  ;;  %s1561_s4 = sshll.u32 %s1304_s28, 7 }
 0x115   : > { %v520_v16 = vpop.permute.xlu0 %519  ;;  %v929_v51 = vsel %vm920_vm4, %v912_v42, %v582_v13 }
 0x116   : > { %787 = vrot.lane.b32.xlu1 %v1522_v7, %s1848_s6  ;;  %v913_v56 = vsel %vm903_vm3, %v896_v5, %v520_v16 }
 0x117   : > { %785 = vrot.lane.b32.xlu0 %v1521_v8, %s1848_s6  ;;  %s2474_s6 = scalar_lea.hbm %s2555_s2, %s1561_s4 }
 0x118   : > { %v834_v25 = vpop.permute.xlu1 %833 }
 0x119   : > { %v772_v26 = vpop.permute.xlu0 %771  ;;  %v995_v17 = vsel %vm988_vm8, %v978_v10, %v834_v25 }
 0x11a   : > { %851 = vrot.lane.b32.xlu1 %v1538_v4, %s1849_s9  ;;  %1607 = vmatprep.mubr.msk.f32.mxu0 %vm1010_vm9, %v995_v17  ;;  %v979_v11 = vsel %vm971_vm7, %v962_v23, %v772_v26 }
 0x11b   : > { %849 = vrot.lane.b32.xlu0 %v1537_v24, %s1849_s9  ;;  %s1850_s9 = smov [#allocation2]  }
 0x11c   : > { %v584_v9 = vpop.permute.xlu1 %583  ;;  %s1722_s20 = sshll.u32 %s1850_s9, 4  ;;  %s1723_s20 = int_to_ptr.vmem [resolvable:$false] %s1722_s20 }
 0x11d   : > { %v394_v18 = vpop.permute.xlu0 %393  ;;  %v930_v2 = vsel %vm920_vm4, %v913_v56, %v584_v9  ;;  %s1724_s24 = scalar_lea.vmem %s1723_s20, 4096  ;;  %p1725_p2 = scmp.lt.s32.totalorder %s2468_s29, %s1723_s20 }
 0x11e   : > { %v880_v4 = vsel %vm869_vm1, %v2089_v35, %v394_v18  ;;  %p1726_p4 = scmp.lt.s32.totalorder %s1724_s24, %s1718_s8 }
 0x120   : > { %v836_v37 = vpop.permute.xlu1 %835  ;;  %p1727_p5 = por %p1726_p4, %p1725_p2 }
 0x121   : > { %v646_v38 = vpop.permute.xlu0 %645  ;;  %v996_v40 = vsel %vm988_vm8, %v979_v11, %v836_v37 }
 0x122   : > { %1608 = vmatmul.mubr.msk.f32.gmra.mxu0 %vm1010_vm9, %v996_v40  ;;  %v946_v53 = vsel %vm937_vm5, %v929_v51, %v646_v38  ;;  %p1728_p6 = pnand %p1727_p5, %p1721_p1 }
 0x124   : > { %v458_v19 = vpop.permute.xlu1 %457 }
 0x125   : > { %v396_v43 = vpop.permute.xlu0 %395  ;;  %v897_v24 = vsel %vm886_vm2, %v880_v4, %v458_v19 }
 0x126   : > { %v881_v35 = vsel %vm869_vm1, %v2103_v41, %v396_v43 }
 0x128   : > { %v710_v44 = vpop.permute.xlu1 %709 }
 0x129   : > { %v648_v31 = vpop.permute.xlu0 %647  ;;  %v963_v55 = vsel %vm954_vm6, %v946_v53, %v710_v44 }
 0x12a   : > { %v947_v3 = vsel %vm937_vm5, %v930_v2, %v648_v31 }
 0x12c   : > { %v522_v45 = vpop.permute.xlu1 %521 }
 0x12d   : > { %v460_v47 = vpop.permute.xlu0 %459  ;;  %v914_v10 = vsel %vm903_vm3, %v897_v24, %v522_v45 }
 0x12e   : > { %v898_v18 = vsel %vm886_vm2, %v881_v35, %v460_v47 }
 0x130   : > { %v774_v14 = vpop.permute.xlu1 %773 }
 0x131   : > { %v712_v50 = vpop.permute.xlu0 %711  ;;  %v980_v58 = vsel %vm971_vm7, %v963_v55, %v774_v14 }
 0x132   : > { %v964_v63 = vsel %vm954_vm6, %v947_v3, %v712_v50 }
 0x134   : > { %v586_v48 = vpop.permute.xlu1 %585 }
 0x135   : > { %v524_v52 = vpop.permute.xlu0 %523  ;;  %v931_v17 = vsel %vm920_vm4, %v914_v10, %v586_v48 }
 0x136   : > { %v915_v23 = vsel %vm903_vm3, %v898_v18, %v524_v52 }
 0x138   : > { %v838_v59 = vpop.permute.xlu1 %837 }
 0x139   : > { %v776_v62 = vpop.permute.xlu0 %775  ;;  %v997_v1 = vsel %vm988_vm8, %v980_v58, %v838_v59 }
 0x13a   : > { %1610 = vmatprep.mubr.msk.f32.mxu1 %vm1010_vm9, %v997_v1  ;;  %v981_v6 = vsel %vm971_vm7, %v964_v63, %v776_v62 }
 0x13c   : > { %v588_v0 = vpop.permute.xlu1 %587 }
 0x13d   : > { %v398_v54 = vpop.permute.xlu0 %397  ;;  %v932_v38 = vsel %vm920_vm4, %v915_v23, %v588_v0 }
 0x13e   : > { %v882_v52 = vsel %vm869_vm1, %v2136_v60, %v398_v54 }
 0x140   : > { %v840_v7 = vpop.permute.xlu1 %839 }
 0x141   : > { %v650_v8 = vpop.permute.xlu0 %649  ;;  %v998_v29 = vsel %vm988_vm8, %v981_v6, %v840_v7 }
 0x142   : > { %1611 = vmatmul.mubr.msk.f32.vlgmr.msra.gmra.mxu1 %vm1010_vm9, %v998_v29  ;;  %v948_v28 = vsel %vm937_vm5, %v931_v17, %v650_v8 }
 0x144   : > { %v462_v57 = vpop.permute.xlu1 %461 }
 0x145   : > { %v400_v49 = vpop.permute.xlu0 %399  ;;  %v899_v51 = vsel %vm886_vm2, %v882_v52, %v462_v57 }
 0x146   : > { %v883_v60 = vsel %vm869_vm1, %v2161_v15, %v400_v49 }
 0x148   : > { %v714_v12 = vpop.permute.xlu1 %713 }
 0x149   : > { %v652_v13 = vpop.permute.xlu0 %651  ;;  %v965_v30 = vsel %vm954_vm6, %v948_v28, %v714_v12 }
 0x14a   : > { %v949_v40 = vsel %vm937_vm5, %v932_v38, %v652_v13 }
 0x14c   : > { %v526_v16 = vpop.permute.xlu1 %525 }
 0x14d   : > { %v464_v20 = vpop.permute.xlu0 %463  ;;  %v916_v53 = vsel %vm903_vm3, %v899_v51, %v526_v16 }
 0x14e   : > { %v900_v54 = vsel %vm886_vm2, %v883_v60, %v464_v20 }
 0x150   : > { %v778_v22 = vpop.permute.xlu1 %777 }
 0x151   : > { %v716_v21 = vpop.permute.xlu0 %715  ;;  %v982_v34 = vsel %vm971_vm7, %v965_v30, %v778_v22 }
 0x152   : > { %v966_v19 = vsel %vm954_vm6, %v949_v40, %v716_v21 }
 0x154   : > { %v590_v25 = vpop.permute.xlu1 %589 }
 0x155   : > { %v528_v26 = vpop.permute.xlu0 %527  ;;  %v933_v59 = vsel %vm920_vm4, %v916_v53, %v590_v25 }
 0x156   : > { %v917_v2 = vsel %vm903_vm3, %v900_v54, %v528_v26 }
 0x158   : > { %v842_v9 = vpop.permute.xlu1 %841 }
 0x159   : > { %v780_v32 = vpop.permute.xlu0 %779  ;;  %v999_v36 = vsel %vm988_vm8, %v982_v34, %v842_v9 }
 0x15a   : > { %1613 = vmatprep.mubr.msk.f32.mxu1 %vm1010_vm9, %v999_v36  ;;  %v983_v44 = vsel %vm971_vm7, %v966_v19, %v780_v32 }
 0x15c   : > { %v592_v11 = vpop.permute.xlu1 %591 }
 0x15d   : > { %v402_v37 = vpop.permute.xlu0 %401  ;;  %v934_v6 = vsel %vm920_vm4, %v917_v2, %v592_v11 }
 0x15e   : > { %v884_v20 = vsel %vm869_vm1, %v2204_v46, %v402_v37 }
 0x160   : > { %v844_v31 = vpop.permute.xlu1 %843 }
 0x161   : > { %v654_v45 = vpop.permute.xlu0 %653  ;;  %v1000_v41 = vsel %vm988_vm8, %v983_v44, %v844_v31 }
 0x162   : > { %1614 = vmatmul.mubr.msk.f32.gmra.mxu1 %vm1010_vm9, %v1000_v41  ;;  %v950_v62 = vsel %vm937_vm5, %v933_v59, %v654_v45 }
 0x164   : > { %v466_v43 = vpop.permute.xlu1 %465 }
 0x165   : > { %v404_v47 = vpop.permute.xlu0 %403  ;;  %v901_v25 = vsel %vm886_vm2, %v884_v20, %v466_v43 }
 0x166   : > { %v885_v21 = vsel %vm869_vm1, %v2230_v61, %v404_v47 }
 0x168   : > { %v718_v14 = vpop.permute.xlu1 %717 }
 0x169   : > { %v656_v50 = vpop.permute.xlu0 %655  ;;  %v967_v1 = vsel %vm954_vm6, %v950_v62, %v718_v14 }
 0x16a   : > { %v951_v7 = vsel %vm937_vm5, %v934_v6, %v656_v50 }
 0x16c   : > { %v530_v33 = vpop.permute.xlu1 %529 }
 0x16d   : > { %v468_v39 = vpop.permute.xlu0 %467  ;;  %v918_v17 = vsel %vm903_vm3, %v901_v25, %v530_v33 }
 0x16e   : > { %v902_v26 = vsel %vm886_vm2, %v885_v21, %v468_v39 }
 0x170   : > { %v782_v42 = vpop.permute.xlu1 %781 }
 0x171   : > { %v720_v48 = vpop.permute.xlu0 %719  ;;  %v984_v27 = vsel %vm971_vm7, %v967_v1, %v782_v42 }
 0x172   : > { %v968_v8 = vsel %vm954_vm6, %v951_v7, %v720_v48 }
 0x174   : > { %v594_v55 = vpop.permute.xlu1 %593 }
 0x175   : > { %v532_v58 = vpop.permute.xlu0 %531  ;;  %v935_v46 = vsel %vm920_vm4, %v918_v17, %v594_v55 }
 0x176   : > { %v919_v28 = vsel %vm903_vm3, %v902_v26, %v532_v58 }
 0x178   : > { %v846_v5 = vpop.permute.xlu1 %845 }
 0x179   : > { %v784_v56 = vpop.permute.xlu0 %783  ;;  %v1001_v0 = vsel %vm988_vm8, %v984_v27, %v846_v5 }
 0x17a   : > { %1616 = vmatprep.mubr.msk.f32.mxu1 %vm1010_vm9, %v1001_v0  ;;  %v985_v15 = vsel %vm971_vm7, %v968_v8, %v784_v56 }
 0x17c   : > { %v658_v3 = vpop.permute.xlu1 %657 }
 0x17d   : > { %v596_v63 = vpop.permute.xlu0 %595  ;;  %v952_v32 = vsel %vm937_vm5, %v935_v46, %v658_v3 }
 0x17e   : > { %v936_v61 = vsel %vm920_vm4, %v919_v28, %v596_v63 }
 0x180   : > { %v660_v29 = vpop.permute.xlu1 %659 }
 0x181   : > { %v848_v57 = vpop.permute.xlu0 %847  ;;  %v953_v36 = vsel %vm937_vm5, %v936_v61, %v660_v29 }
 0x182   : > { %v1002_v49 = vsel %vm988_vm8, %v985_v15, %v848_v57  ;;  %v1600_v12 = vpop.f32.mrf.mxu0 }
 0x183   : > { %1617 = vmatmul.mubr.msk.f32.gmra.mxu1 %vm1010_vm9, %v1002_v49  ;;  %1209 = vst [vmem:[%s2429_s21 + $0x8] sm:$0xff] %v1600_v12  ;;  %v1246_v4 = vmul.f32 %v1600_v12, %v1600_v12 }
 0x184   : > { %v724_v13 = vpop.permute.xlu1 %723  ;;  %v1129_v22 = vpop.f32.mrf.mxu0 }
 0x185   : > { %v722_v16 = vpop.permute.xlu0 %721  ;;  %1208 = vst [vmem:[%s2429_s21] sm:$0xff] %v1129_v22  ;;  %v1224_v24 = vadd.f32 %v1600_v12, %v1129_v22  ;;  %v1245_v10 = vmul.f32 %v1129_v22, %v1129_v22  ;;  %v970_v35 = vsel %vm954_vm6, %v953_v36, %v724_v13 }
 0x186   : > { %v969_v18 = vsel %vm954_vm6, %v952_v32, %v722_v16 }
 0x187   : > { %v1261_v30 = vadd.f32 %v1246_v4, %v1245_v10 }
 0x188   : > { %v788_v34 = vpop.permute.xlu1 %787 }
 0x189   : > { %v786_v9 = vpop.permute.xlu0 %785  ;;  %v987_v23 = vsel %vm971_vm7, %v970_v35, %v788_v34 }
 0x18a   : > { %v986_v11 = vsel %vm971_vm7, %v969_v18, %v786_v9 }
 0x18c   : > { %v852_v37 = vpop.permute.xlu1 %851 }
 0x18d   : > { %v850_v38 = vpop.permute.xlu0 %849  ;;  %v1004_v40 = vsel %vm988_vm8, %v987_v23, %v852_v37 }
 0x18e   : > { %v1003_v19 = vsel %vm988_vm8, %v986_v11, %v850_v38 }
 0x18f   : > { %1619 = vmatprep.mubr.msk.f32.mxu1 %vm1010_vm9, %v1003_v19 }
 0x190   : > { %1620 = vmatmul.mubr.msk.f32.gmra.mxu1 %vm1010_vm9, %v1004_v40 }
 0x1a2   : > { %v1603_v44 = vpop.f32.mrf.mxu0 }
 0x1a3   : > { %1211 = vst [vmem:[%s2429_s21 + $0x18] sm:$0xff] %v1603_v44  ;;  %v1248_v43 = vmul.f32 %v1603_v44, %v1603_v44 }
 0x1a4   : > { %v1139_v31 = vpop.f32.mrf.mxu0 }
 0x1a5   : > { %1210 = vst [vmem:[%s2429_s21 + $0x10] sm:$0xff] %v1139_v31  ;;  %v1225_v45 = vadd.f32 %v1224_v24, %v1139_v31  ;;  %v1247_v41 = vmul.f32 %v1139_v31, %v1139_v31 }
 0x1a7   : > { %v1262_v47 = vadd.f32 %v1261_v30, %v1247_v41  ;;  %v1226_v14 = vadd.f32 %v1603_v44, %v1225_v45 }
 0x1a9   : > { %v1263_v50 = vadd.f32 %v1262_v47, %v1248_v43 }
 0x1c2   : > { %v1606_v33 = vpop.f32.mrf.mxu0 }
 0x1c3   : > { %1213 = vst [vmem:[%s2429_s21 + $0x28] sm:$0xff] %v1606_v33  ;;  %v1250_v52 = vmul.f32 %v1606_v33, %v1606_v33 }
 0x1c4   : > { %v1149_v39 = vpop.f32.mrf.mxu0 }
 0x1c5   : > { %1212 = vst [vmem:[%s2429_s21 + $0x20] sm:$0xff] %v1149_v39  ;;  %v1227_v42 = vadd.f32 %v1226_v14, %v1149_v39  ;;  %v1249_v48 = vmul.f32 %v1149_v39, %v1149_v39 }
 0x1c7   : > { %v1264_v51 = vadd.f32 %v1263_v50, %v1249_v48  ;;  %v1228_v53 = vadd.f32 %v1606_v33, %v1227_v42 }
 0x1c9   : > { %v1265_v55 = vadd.f32 %v1264_v51, %v1250_v52 }
 0x1e2   : > { %v1609_v58 = vpop.f32.mrf.mxu0 }
 0x1e3   : > { %1215 = vst [vmem:[%s2429_s21 + $0x38] sm:$0xff] %v1609_v58  ;;  %v1252_v27 = vmul.f32 %v1609_v58, %v1609_v58 }
 0x1e4   : > { %v1159_v59 = vpop.f32.mrf.mxu0 }
 0x1e5   : > { %1214 = vst [vmem:[%s2429_s21 + $0x30] sm:$0xff] %v1159_v59  ;;  %v1229_v62 = vadd.f32 %v1228_v53, %v1159_v59  ;;  %v1251_v1 = vmul.f32 %v1159_v59, %v1159_v59 }
 0x1e7   : > { %v1230_v5 = vadd.f32 %v1609_v58, %v1229_v62  ;;  %v1266_v56 = vadd.f32 %v1265_v55, %v1251_v1 }
 0x1e9   : > { %v1267_v0 = vadd.f32 %v1266_v56, %v1252_v27 }
 0x202   : > { %v1612_v60 = vpop.f32.mrf.mxu1 }
 0x203   : > { %1217 = vst [vmem:[%s2429_s21 + $0x48] sm:$0xff] %v1612_v60  ;;  %v1254_v63 = vmul.f32 %v1612_v60, %v1612_v60 }
 0x204   : > { %v1169_v54 = vpop.f32.mrf.mxu1 }
 0x205   : > { %1216 = vst [vmem:[%s2429_s21 + $0x40] sm:$0xff] %v1169_v54  ;;  %v1231_v2 = vadd.f32 %v1230_v5, %v1169_v54  ;;  %v1253_v3 = vmul.f32 %v1169_v54, %v1169_v54 }
 0x207   : > { %v1268_v6 = vadd.f32 %v1267_v0, %v1253_v3  ;;  %v1232_v7 = vadd.f32 %v1612_v60, %v1231_v2 }
 0x209   : > { %v1269_v8 = vadd.f32 %v1268_v6, %v1254_v63 }
 0x222   : > { %v1615_v15 = vpop.f32.mrf.mxu1 }
 0x223   : > { %1219 = vst [vmem:[%s2429_s21 + $0x58] sm:$0xff] %v1615_v15  ;;  %v1256_v20 = vmul.f32 %v1615_v15, %v1615_v15 }
 0x224   : > { %v1179_v29 = vpop.f32.mrf.mxu1 }
 0x225   : > { %1218 = vst [vmem:[%s2429_s21 + $0x50] sm:$0xff] %v1179_v29  ;;  %v1255_v49 = vmul.f32 %v1179_v29, %v1179_v29  ;;  %v1233_v13 = vadd.f32 %v1232_v7, %v1179_v29 }
 0x227   : > { %v1270_v16 = vadd.f32 %v1269_v8, %v1255_v49  ;;  %v1234_v22 = vadd.f32 %v1615_v15, %v1233_v13 }
 0x229   : > { %v1271_v24 = vadd.f32 %v1270_v16, %v1256_v20 }
 0x243   : > { %v1618_v57 = vpop.f32.mrf.mxu1 }
 0x244   : > { %1221 = vst [vmem:[%s2429_s21 + $0x68] sm:$0xff] %v1618_v57  ;;  %v1258_v26 = vmul.f32 %v1618_v57, %v1618_v57 }
 0x245   : > { %v1189_v12 = vpop.f32.mrf.mxu1 }
 0x246   : > { %1220 = vst [vmem:[%s2429_s21 + $0x60] sm:$0xff] %v1189_v12  ;;  %v1257_v21 = vmul.f32 %v1189_v12, %v1189_v12  ;;  %v1235_v4 = vadd.f32 %v1234_v22, %v1189_v12 }
 0x248   : > { %v1272_v10 = vadd.f32 %v1271_v24, %v1257_v21  ;;  %v1236_v17 = vadd.f32 %v1618_v57, %v1235_v4 }
 0x24a   : > { %v1273_v9 = vadd.f32 %v1272_v10, %v1258_v26 }
 0x250   : > { %v1621_v25 = vpop.f32.mrf.mxu1 }
 0x251   : > { %1223 = vst [vmem:[%s2429_s21 + $0x78] sm:$0xff] %v1621_v25 }
 0x252   : > { %v1199_v28 = vpop.f32.mrf.mxu1 }
 0x253   : > { %1222 = vst [vmem:[%s2429_s21 + $0x70] sm:$0xff] %v1199_v28  ;;  %v1237_v30 = vadd.f32 %v1236_v17, %v1199_v28  ;;  %v1259_v34 = vmul.f32 %v1199_v28, %v1199_v28 }
 0x254   : > { %1731 = shalt.err (!%p1728_p6)
}
 0x255   : > { %s1732_s21 = scalar_lea.hbm %s2474_s6, 2048  ;;  %s1736_s4 = scalar_lea.hbm %s2555_s2, 8192 }
 0x256   : > { %p1733_p7 = scmp.ne.s32.totalorder %s2474_s6, %s1732_s21  ;;  %p1737_p11 = scmp.lt.s32.totalorder %s2474_s6, %s2555_s2 }
 0x257   : > { %p1738_p12 = scmp.lt.s32.totalorder %s1736_s4, %s1732_s21 }
 0x258   : > { %p1734_p9 = pnand %p1733_p7, %p1924_p3 }
 0x259   : > { %p1739_p13 = por %p1738_p12, %p1737_p11 }
 0x25a   : > { %p1735_p10 = pneg %p1734_p9 }
 0x25c   : > { %p1740_p0 = pnand %p1739_p13, %p1735_p10 }
 0x25e   : > { %1743 = shalt.err (!%p1740_p0)
}
 0x25f   : > { %s1851_s8 = smov 128   ;;  %v1260_v46 = vmul.f32 %v1621_v25, %v1621_v25  ;;  %v1238_v61 = vadd.f32 %v1621_v25, %v1237_v30  ;;  %v1274_v32 = vadd.f32 %v1273_v9, %v1259_v34  ;;  %s1440_s9 = sshll.u32 %s2419_s10, 1  ;;  %vm1282_vm10 = vcmask 1040384  }
 0x260   : > { %1633 = dma.vmem_to_hbm [thread:$0]  (%p1924_p3), %s2468_s29, 2048, %s2474_s6, %s1286_s7, %s1851_s8, %s1851_s8, %s1842_s11  }
 0x261   : > { %v1239_v36 = vrot.slane %v1238_v61, 4  ;;  %v1275_v35 = vadd.f32 %v1274_v32, %v1260_v46  ;;  %s1563_s20 = sshll.u32 %s1946_s5, 5  ;;  %s200_s11 = scalar_lea.vmem [#allocation4], %s1440_s9 }
 0x262   : > { %s1325_s29 = sshll.u32 %s200_s11, 4  ;;  %s2506_s24 = scalar_lea.hbm %s2556_s3, %s1563_s20  ;;  %s1326_s29 = int_to_ptr.vmem [resolvable:$true] %s1325_s29 }
 0x263   : > { %v1240_v18 = vadd.f32 %v1239_v36, %v1238_v61  ;;  %v1276_v23 = vrot.slane %v1275_v35, 4  ;;  %s1291_s21 = scalar_lea.sflag [#allocation5], %s2419_s10  ;;  %s1744_s27 = scalar_lea.vmem %s1326_s29, 32 }
 0x264   : > { %p1745_p1 = scmp.ne.s32.totalorder %s1326_s29, %s1744_s27  ;;  %s1852_s5 = smov [#allocation4]  }
 0x265   : > { %v1241_v11 = vrot.slane %v1240_v18, 2  ;;  %v1277_v37 = vadd.f32 %v1276_v23, %v1275_v35  ;;  %s1748_s28 = sshll.u32 %s1852_s5, 4  ;;  %s1749_s28 = int_to_ptr.vmem [resolvable:$false] %s1748_s28 }
 0x266   : > { %p1746_p2 = pnand %p1745_p1, %p1924_p3  ;;  %s1750_s4 = scalar_lea.vmem %s1749_s28, 64 }
 0x267   : > { %v1242_v38 = vadd.f32 %v1241_v11, %v1240_v18  ;;  %v1278_v40 = vrot.slane %v1277_v37, 2  ;;  %p1751_p5 = scmp.lt.s32.totalorder %s1326_s29, %s1749_s28  ;;  %p1752_p6 = scmp.lt.s32.totalorder %s1750_s4, %s1744_s27 }
 0x268   : > { %p1747_p4 = pneg %p1746_p2 }
 0x269   : > { %v1243_v19 = vrot.slane %v1242_v38, 1  ;;  %v1279_v44 = vadd.f32 %v1278_v40, %v1277_v37  ;;  %p1753_p7 = por %p1752_p6, %p1751_p5 }
 0x26b   : > { %v1280_v31 = vrot.slane %v1279_v44, 1  ;;  %v1244_v45 = vadd.f32 %v1243_v19, %v1242_v38  ;;  %p1754_p9 = pnand %p1753_p7, %p1747_p4 }
 0x26d   : > { %v1281_v41 = vadd.f32 %v1280_v31, %v1279_v44 }
 0x26f   : > { %v1283_v43 = vsel %vm1282_vm10, %v1244_v45, %v1281_v41 }
 0x270   : > { %1284 = vst [vmem:[%s200_s11] sm:$0x3] %v1283_v43 }
 0x271   : > { %1757 = shalt.err (!%p1754_p9)
}
 0x272   : > { %s1758_s15 = scalar_lea.hbm %s2506_s24, 32  ;;  %s1762_s8 = scalar_lea.hbm %s2556_s3, 128 }
 0x273   : > { %p1759_p10 = scmp.ne.s32.totalorder %s2506_s24, %s1758_s15  ;;  %p1763_p13 = scmp.lt.s32.totalorder %s2506_s24, %s2556_s3 }
 0x274   : > { %p1764_p0 = scmp.lt.s32.totalorder %s1762_s8, %s1758_s15 }
 0x275   : > { %p1760_p11 = pnand %p1759_p10, %p1924_p3 }
 0x276   : > { %p1765_p1 = por %p1764_p0, %p1763_p13 }
 0x277   : > { %p1761_p12 = pneg %p1760_p11 }
 0x279   : > { %p1766_p2 = pnand %p1765_p1, %p1761_p12 }
 0x27b   : > { %1769 = shalt.err (!%p1766_p2)
}
 0x27c   : > { %1634 = dma.vmem_to_hbm [thread:$0]  (%p1924_p3), %s1326_s29, 32, %s2506_s24, %s1291_s21  }
 0x27d PF: > { %p1644_p4 = scmp.ge.s32.totalorder %s1840_s19, 2  ;;  %s1337_s11 = sand.u32 1, %s1812_s12  }
 0x27e   : > { %s1338_s6 = scalar_lea.sflag [#allocation3], %s1337_s11 }
 0x27f   : > { %p1638_p5 = pnand %p1644_p4, %p1933_p8 }
 0x281   : > { %p1639_p6 = pneg %p1638_p5 }
 0x283   : > { %1803 = dma.done.wait (%p1639_p6), %s1338_s6, 2048  }
 0x284   : > { %1805 = vsyncadd (%p1639_p6), %s1338_s6, 4294965248  ;;  %s1347_s7 = scalar_lea.sflag [#allocation5], %s1337_s11 }
 0x285   : > { %1807 = dma.done.wait (%p1639_p6), %s1347_s7, 32  }
 0x286   : > { %1809 = vsyncadd (%p1639_p6), %s1347_s7, 4294967264  ;;  %s20_s19 = sadd.s32 1, %s1840_s19   ;;  %s2559_s12 = smov %s1816_s13 }
 0x287   : > { %p17_p7 = scmp.ge.s32.totalorder %s20_s19, 6   ;;  %s2560_s13 = smov %s1820_s14 }
 0x288   : > { %s2561_s14 = smov %s1942_s30  ;;  %s2562_s15 = smov %s1832_s17 }
 0x289   : > { %s2563_s16 = smov %s1836_s18  ;;  %s2564_s17 = smov %s2567_s22 }
 0x28a   : > { %s2565_s18 = smov %s2571_s23  ;;  %19 = sbr.rel (!%p17_p7) target bundleno = 7 (0x7), region = 82 }
 0x28f   :  { %1352 = vsyncpa [#allocation3], 1 }
 0x290   :  { %1354 = vsyncpa [#allocation3 + $0x1], 1 }
 0x291   :  { %1355 = vsyncpa [#allocation5], 1 }
 0x292   :  { %1357 = vsyncpa [#allocation5 + $0x1], 1 }

</bundles_post_ra>
